<compile_context>
chip_gen: v7x
topology: tpu7x:2x2x1
jax: 0.10.0
libtpu: 0.0.40
codegen_flags: <defaults>
</compile_context>

<pallas_src>
import functools

import jax
import jax.numpy as jnp
from jax import lax
from jax.experimental import pallas as pl
from jax.experimental.pallas import tpu as pltpu

_LANES = 128
_ROW_ALIGN = 32  # multiple of f32/i32 sublane tiling (8) and int8 packing (32)


def _nnpu_partials_kernel(x_ref, t_ref, out_ref,
                          pos_acc, pyp_acc, uyu_acc, *,
                          n_valid, positive_cls, unlabeled_cls,
                          trows, tiles_per_core):
    c = pl.program_id(0)    # core (parallel) axis
    i = pl.program_id(1)    # tile (reduction / "arbitrary") axis

    @pl.when(i == 0)
    def _init():
        pos_acc[...] = jnp.zeros_like(pos_acc)
        pyp_acc[...] = jnp.zeros_like(pyp_acc)
        uyu_acc[...] = jnp.zeros_like(uyu_acc)

    # Validity mask from the *intended* global element index: host tail pad,
    # Pallas partial edge blocks and clamped out-of-range blocks all drop out.
    row0 = (c * tiles_per_core + i) * trows
    row_iota = lax.broadcasted_iota(jnp.int32, (trows, _LANES), 0)
    lane_iota = lax.broadcasted_iota(jnp.int32, (trows, _LANES), 1)
    gidx = (row_iota + row0) * _LANES + lane_iota
    valid = gidx < n_valid

    # Promote in-kernel (v5e has no bf16 VALU/EUP); zero invalid lanes so
    # garbage in partial blocks can never produce 0 * NaN = NaN.
    x = jnp.where(valid, x_ref[...].astype(jnp.float32), 0.0)
    t = t_ref[...]

    positive = jnp.where((t == positive_cls) & valid, 1.0, 0.0)
    unlabeled = jnp.where((t == unlabeled_cls) & valid, 1.0, 0.0)

    # sigmoid(-x) = 1 / (1 + exp(x)): one EUP exp + exact reciprocal.
    y_positive = pl.reciprocal(1.0 + jnp.exp(x), approx=False)

    def accum(acc_ref, term):
        if trows % 8 == 0:
            # Pure vreg-wise VPU adds; the cross-sublane/lane collapse is
            # deferred to the wrapper (once per kernel, not once per tile).
            acc_ref[...] += term.reshape(trows // 8, 8, _LANES).sum(axis=0)
        else:
            # Single full-extent block whose row count is not a multiple of 8.
            acc_ref[0:1, :] += jnp.sum(term, axis=0, keepdims=True)

    accum(pos_acc, positive)                        # sum(positive)
    accum(pyp_acc, positive * y_positive)           # sum(positive * loss(x))
    accum(uyu_acc, unlabeled * (1.0 - y_positive))  # sum(unlabeled * loss(-x))

    @pl.when(i == pl.num_programs(1) - 1)
    def _write_partials():
        out_ref[0, 0, :, :] = pos_acc[...]
        out_ref[0, 1, :, :] = pyp_acc[...]
        out_ref[0, 2, :, :] = uyu_acc[...]


def _objective(n_pos_raw, s_pyp, s_uyu, n_total, prior, beta, nnpu):
    n_pos = jnp.maximum(1.0, n_pos_raw)
    # Two-class assumption: everything that is not positive is unlabeled.
    n_unl = jnp.maximum(1.0, jnp.float32(n_total) - n_pos_raw)
    s_pyu = n_pos_raw - s_pyp            # sum(positive * (1 - y_positive))
    positive_risk = prior * s_pyp / n_pos
    negative_risk = s_uyu / n_unl - prior * s_pyu / n_pos
    if nnpu:
        # Forward value of the PyTorch detach branch:
        #   (pos - beta + gamma*neg).detach() - gamma*neg  ==  pos - beta
        return jnp.where(negative_risk < -beta,
                         positive_risk - beta,
                         positive_risk + negative_risk)
    return positive_risk + negative_risk


def _jax_fallback(x_flat, t_flat, prior, positive_cls, beta, nnpu):
    # Small-N path: a fused XLA reduction beats pallas_call launch overhead.
    xf = x_flat.astype(jnp.float32)
    positive = (t_flat == positive_cls).astype(jnp.float32)
    unlabeled = (t_flat == (1 - positive_cls)).astype(jnp.float32)
    n_pos = jnp.maximum(1.0, positive.sum())
    n_unl = jnp.maximum(1.0, unlabeled.sum())
    y_pos = jax.nn.sigmoid(-xf)
    y_unl = jax.nn.sigmoid(xf)
    positive_risk = jnp.sum(prior * positive / n_pos * y_pos)
    negative_risk = jnp.sum((unlabeled / n_unl - prior * positive / n_pos) * y_unl)
    if nnpu:
        return jnp.where(negative_risk < -beta,
                         positive_risk - beta,
                         positive_risk + negative_risk)
    return positive_risk + negative_risk


def non_negative_pu_loss(x, t, *, prior, positive_class=0, gamma=1.0, beta=0.0,
                         nnpu=True, tile_rows=4096, num_cores=2,
                         small_n_threshold=4096):
    """x: (N, 1) or (N,) logits (any float dtype), t: (N,) labels. Scalar loss."""
    del gamma  # no forward effect (detach trick); only matters for a custom_vjp

    x_flat = jnp.asarray(x).reshape(-1)           # keep native dtype (bf16 OK)
    t_flat = jnp.asarray(t).reshape(-1)
    if not jnp.issubdtype(t_flat.dtype, jnp.integer):
        t_flat = t_flat.astype(jnp.int32)
    n = x_flat.shape[0]
    pos_c = int(positive_class)
    unl_c = 1 - pos_c

    if n <= small_n_threshold:
        return _jax_fallback(x_flat, t_flat, float(prior), pos_c, float(beta),
                             bool(nnpu))

    # Lane-dense layout (rows, 128). Only a <=127-element tail pad is taken
    # (when n is not a multiple of 128); everything else is masked in-kernel.
    rows = pl.cdiv(n, _LANES)
    tail = rows * _LANES - n
    if tail:
        x_flat = jnp.pad(x_flat, (0, tail))
        t_flat = jnp.pad(t_flat, (0, tail))       # pad value irrelevant (masked)
    x2d = x_flat.reshape(rows, _LANES)
    t2d = t_flat.reshape(rows, _LANES)

    if rows <= _ROW_ALIGN:
        trows = rows                               # single full-extent block
    else:
        trows = max(_ROW_ALIGN,
                    (min(int(tile_rows), rows) // _ROW_ALIGN) * _ROW_ALIGN)
    total_tiles = pl.cdiv(rows, trows)
    cores = max(1, min(int(num_cores), total_tiles))
    tiles_per_core = pl.cdiv(total_tiles, cores)
    last_block = total_tiles - 1

    def _in_map(c, i):
        # Clamp so the DMA stays in bounds when cores * tiles_per_core exceeds
        # total_tiles; the duplicate block's contribution is masked in-kernel.
        return (jnp.minimum(c * tiles_per_core + i, last_block), 0)

    kernel = functools.partial(
        _nnpu_partials_kernel,
        n_valid=n,
        positive_cls=pos_c,
        unlabeled_cls=unl_c,
        trows=trows,
        tiles_per_core=tiles_per_core,
    )

    partials = pl.pallas_call(
        kernel,
        out_shape=jax.ShapeDtypeStruct((cores, 3, 8, _LANES), jnp.float32),
        grid_spec=pltpu.PrefetchScalarGridSpec(
            num_scalar_prefetch=0,
            grid=(cores, tiles_per_core),
            in_specs=[
                pl.BlockSpec((trows, _LANES), _in_map),
                pl.BlockSpec((trows, _LANES), _in_map),
            ],
            out_specs=pl.BlockSpec((1, 3, 8, _LANES), lambda c, i: (c, 0, 0, 0)),
            scratch_shapes=[pltpu.VMEM((8, _LANES), jnp.float32)] * 3,
        ),
        compiler_params=pltpu.CompilerParams(
            dimension_semantics=("parallel", "arbitrary")),
    )(x2d, t2d)

    sums = jnp.sum(partials, axis=(0, 2, 3))       # (3,): tiny combine in XLA
    return _objective(sums[0], sums[1], sums[2], n, float(prior), float(beta),
                      bool(nnpu))


def _reference(x, t, *, prior, positive_class=0, gamma=1.0, beta=0.0, nnpu=True):
    # Pure-JAX mirror of the PyTorch forward.
    del gamma
    t = t[:, None]
    positive = (t == positive_class).astype(jnp.float32)
    unlabeled = (t == 1 - positive_class).astype(jnp.float32)
    n_positive = jnp.maximum(1.0, positive.sum())
    n_unlabeled = jnp.maximum(1.0, unlabeled.sum())
    xf = x.astype(jnp.float32)
    y_positive = jax.nn.sigmoid(-xf)
    y_unlabeled = jax.nn.sigmoid(xf)
    positive_risk = jnp.sum(prior * positive / n_positive * y_positive)
    negative_risk = jnp.sum(
        (unlabeled / n_unlabeled - prior * positive / n_positive) * y_unlabeled)
    if nnpu:
        return jnp.where(negative_risk < -beta,
                         positive_risk - beta,
                         positive_risk + negative_risk)
    return positive_risk + negative_risk


if __name__ == "__main__":
    key = jax.random.PRNGKey(0)
    kx, kt = jax.random.split(key)
    prior = 0.3

    # Case 1: multi-tile, 2-core split, ragged tail -> exercises the validity
    # mask, the partial edge block, and out-of-range block clamping.
    N1 = 301 * 128 - 111   # 38417, not a multiple of 128
    x1 = jax.random.normal(kx, (N1, 1), dtype=jnp.float32)
    t1 = jax.random.bernoulli(kt, 0.3, (N1,)).astype(jnp.int32)
    out1 = non_negative_pu_loss(x1, t1, prior=prior, positive_class=0,
                                beta=0.0, nnpu=True,
                                tile_rows=64, small_n_threshold=0)
    out1 = jax.block_until_ready(out1)
    ref1 = _reference(x1, t1, prior=prior)
    assert jnp.allclose(out1, ref1, atol=2e-5, rtol=2e-5), (out1, ref1)

    # Case 2: small N forced through the kernel (single full-extent block).
    N2 = 256
    x2 = jax.random.normal(kx, (N2, 1), dtype=jnp.float32)
    t2 = jax.random.bernoulli(kt, 0.3, (N2,)).astype(jnp.int32)
    out2 = non_negative_pu_loss(x2, t2, prior=prior, small_n_threshold=0)
    out2 = jax.block_until_ready(out2)
    ref2 = _reference(x2, t2, prior=prior)
    assert jnp.allclose(out2, ref2, atol=2e-5, rtol=2e-5), (out2, ref2)

    # Case 3: small-N fast path (pure JAX, default threshold).
    out3 = non_negative_pu_loss(x2, t2, prior=prior)
    out3 = jax.block_until_ready(out3)
    assert jnp.allclose(out3, ref2, atol=2e-5, rtol=2e-5), (out3, ref2)

    print("KERNEL_OK")
</pallas_src>

<mosaic_0001>
module attributes {stable_mosaic.version = 11 : i64} {
  func.func @_nnpu_partials_kernel(%arg0: i32, %arg1: i32, %arg2: memref<64x128xf32, #tpu.memory_space<vmem>>, %arg3: memref<64x128xi32, #tpu.memory_space<vmem>>, %arg4: memref<1x3x8x128xf32, #tpu.memory_space<vmem>>, %arg5: memref<8x128xf32, #tpu.memory_space<vmem>>, %arg6: memref<8x128xf32, #tpu.memory_space<vmem>>, %arg7: memref<8x128xf32, #tpu.memory_space<vmem>>) attributes {dimension_semantics = [#tpu.dimension_semantics<parallel>, #tpu.dimension_semantics<arbitrary>], iteration_bounds = array<i64: 2, 3>, scalar_prefetch = 0 : i64, scratch_operands = 3 : i64, tpu.core_type = #tpu.core_type<tc>, window_params = [{transform_indices = @transform_0, window_bounds = array<i64: 64, 128>}, {transform_indices = @transform_1, window_bounds = array<i64: 64, 128>}, {transform_indices = @transform_2, window_bounds = array<i64: 1, 3, 8, 128>}]} {
    %c0_i32 = arith.constant 0 : i32
    %0 = arith.cmpi eq, %arg1, %c0_i32 : i32
    %1 = arith.extui %0 : i1 to i32
    %c0_i32_0 = arith.constant 0 : i32
    %2 = arith.cmpi ne, %1, %c0_i32_0 : i32
    scf.if %2 {
      %cst_27 = arith.constant 0.000000e+00 : f32
      %57 = vector.broadcast %cst_27 : f32 to vector<8x128xf32>
      %c0_28 = arith.constant 0 : index
      %c0_29 = arith.constant 0 : index
      %58 = vector.load %arg5[%c0_28, %c0_29] : memref<8x128xf32, #tpu.memory_space<vmem>>, vector<8x128xf32>
      tpu.vector_store %arg5[%c0_28, %c0_29], %57 {strides = array<i32>} : memref<8x128xf32, #tpu.memory_space<vmem>>, vector<8x128xf32>,
      %cst_30 = arith.constant 0.000000e+00 : f32
      %59 = vector.broadcast %cst_30 : f32 to vector<8x128xf32>
      %c0_31 = arith.constant 0 : index
      %c0_32 = arith.constant 0 : index
      %60 = vector.load %arg6[%c0_31, %c0_32] : memref<8x128xf32, #tpu.memory_space<vmem>>, vector<8x128xf32>
      tpu.vector_store %arg6[%c0_31, %c0_32], %59 {strides = array<i32>} : memref<8x128xf32, #tpu.memory_space<vmem>>, vector<8x128xf32>,
      %cst_33 = arith.constant 0.000000e+00 : f32
      %61 = vector.broadcast %cst_33 : f32 to vector<8x128xf32>
      %c0_34 = arith.constant 0 : index
      %c0_35 = arith.constant 0 : index
      %62 = vector.load %arg7[%c0_34, %c0_35] : memref<8x128xf32, #tpu.memory_space<vmem>>, vector<8x128xf32>
      tpu.vector_store %arg7[%c0_34, %c0_35], %61 {strides = array<i32>} : memref<8x128xf32, #tpu.memory_space<vmem>>, vector<8x128xf32>,
    } else {
    }
    %c3_i32 = arith.constant 3 : i32
    %3 = arith.muli %arg0, %c3_i32 : i32
    %4 = arith.addi %3, %arg1 : i32
    %c64_i32 = arith.constant 64 : i32
    %5 = arith.muli %4, %c64_i32 : i32
    %6 = tpu.iota {dimensions = array<i32: 0>} : vector<64x128xi32>
    %7 = tpu.iota {dimensions = array<i32: 1>} : vector<64x128xi32>
    %8 = vector.broadcast %5 : i32 to vector<64x128xi32>
    %9 = arith.addi %6, %8 : vector<64x128xi32>
    %c128_i32 = arith.constant 128 : i32
    %10 = vector.broadcast %c128_i32 : i32 to vector<64x128xi32>
    %11 = arith.muli %9, %10 : vector<64x128xi32>
    %12 = arith.addi %11, %7 : vector<64x128xi32>
    %c38417_i32 = arith.constant 38417 : i32
    %13 = vector.broadcast %c38417_i32 : i32 to vector<64x128xi32>
    %14 = arith.cmpi slt, %12, %13 : vector<64x128xi32>
    %c0 = arith.constant 0 : index
    %c0_1 = arith.constant 0 : index
    %15 = vector.load %arg2[%c0, %c0_1] : memref<64x128xf32, #tpu.memory_space<vmem>>, vector<64x128xf32>
    %cst = arith.constant 0.000000e+00 : f32
    %16 = vector.broadcast %cst : f32 to vector<64x128xf32>
    %17 = arith.select %14, %15, %16 : vector<64x128xi1>, vector<64x128xf32>
    %c0_2 = arith.constant 0 : index
    %c0_3 = arith.constant 0 : index
    %18 = vector.load %arg3[%c0_2, %c0_3] : memref<64x128xi32, #tpu.memory_space<vmem>>, vector<64x128xi32>
    %c0_i32_4 = arith.constant 0 : i32
    %19 = vector.broadcast %c0_i32_4 : i32 to vector<64x128xi32>
    %20 = arith.cmpi eq, %18, %19 : vector<64x128xi32>
    %21 = arith.andi %20, %14 : vector<64x128xi1>
    %cst_5 = arith.constant 1.000000e+00 : f32
    %cst_6 = arith.constant 0.000000e+00 : f32
    %22 = vector.broadcast %cst_5 : f32 to vector<64x128xf32>
    %23 = vector.broadcast %cst_6 : f32 to vector<64x128xf32>
    %24 = arith.select %21, %22, %23 : vector<64x128xi1>, vector<64x128xf32>
    %c1_i32 = arith.constant 1 : i32
    %25 = vector.broadcast %c1_i32 : i32 to vector<64x128xi32>
    %26 = arith.cmpi eq, %18, %25 : vector<64x128xi32>
    %27 = arith.andi %26, %14 : vector<64x128xi1>
    %cst_7 = arith.constant 1.000000e+00 : f32
    %cst_8 = arith.constant 0.000000e+00 : f32
    %28 = vector.broadcast %cst_7 : f32 to vector<64x128xf32>
    %29 = vector.broadcast %cst_8 : f32 to vector<64x128xf32>
    %30 = arith.select %27, %28, %29 : vector<64x128xi1>, vector<64x128xf32>
    %31 = math.exp %17 : vector<64x128xf32>
    %cst_9 = arith.constant 1.000000e+00 : f32
    %32 = vector.broadcast %cst_9 : f32 to vector<64x128xf32>
    %33 = arith.addf %32, %31 : vector<64x128xf32>
    %34 = tpu.reciprocal %33 : vector<64x128xf32> -> vector<64x128xf32>
    %c0_10 = arith.constant 0 : index
    %c0_11 = arith.constant 0 : index
    %35 = vector.load %arg5[%c0_10, %c0_11] : memref<8x128xf32, #tpu.memory_space<vmem>>, vector<8x128xf32>
    %36 = vector.shape_cast %24 : vector<64x128xf32> to vector<8x8x128xf32>
    %cst_12 = arith.constant dense<0.000000e+00> : vector<8x128xf32>
    %37 = vector.multi_reduction <add>, %36, %cst_12 [0] : vector<8x8x128xf32> to vector<8x128xf32>
    %38 = arith.addf %35, %37 : vector<8x128xf32>
    %c0_13 = arith.constant 0 : index
    %c0_14 = arith.constant 0 : index
    %39 = vector.load %arg5[%c0_13, %c0_14] : memref<8x128xf32, #tpu.memory_space<vmem>>, vector<8x128xf32>
    tpu.vector_store %arg5[%c0_13, %c0_14], %38 {strides = array<i32>} : memref<8x128xf32, #tpu.memory_space<vmem>>, vector<8x128xf32>,
    %40 = arith.mulf %24, %34 : vector<64x128xf32>
    %c0_15 = arith.constant 0 : index
    %c0_16 = arith.constant 0 : index
    %41 = vector.load %arg6[%c0_15, %c0_16] : memref<8x128xf32, #tpu.memory_space<vmem>>, vector<8x128xf32>
    %42 = vector.shape_cast %40 : vector<64x128xf32> to vector<8x8x128xf32>
    %cst_17 = arith.constant dense<0.000000e+00> : vector<8x128xf32>
    %43 = vector.multi_reduction <add>, %42, %cst_17 [0] : vector<8x8x128xf32> to vector<8x128xf32>
    %44 = arith.addf %41, %43 : vector<8x128xf32>
    %c0_18 = arith.constant 0 : index
    %c0_19 = arith.constant 0 : index
    %45 = vector.load %arg6[%c0_18, %c0_19] : memref<8x128xf32, #tpu.memory_space<vmem>>, vector<8x128xf32>
    tpu.vector_store %arg6[%c0_18, %c0_19], %44 {strides = array<i32>} : memref<8x128xf32, #tpu.memory_space<vmem>>, vector<8x128xf32>,
    %cst_20 = arith.constant 1.000000e+00 : f32
    %46 = vector.broadcast %cst_20 : f32 to vector<64x128xf32>
    %47 = arith.subf %46, %34 : vector<64x128xf32>
    %48 = arith.mulf %30, %47 : vector<64x128xf32>
    %c0_21 = arith.constant 0 : index
    %c0_22 = arith.constant 0 : index
    %49 = vector.load %arg7[%c0_21, %c0_22] : memref<8x128xf32, #tpu.memory_space<vmem>>, vector<8x128xf32>
    %50 = vector.shape_cast %48 : vector<64x128xf32> to vector<8x8x128xf32>
    %cst_23 = arith.constant dense<0.000000e+00> : vector<8x128xf32>
    %51 = vector.multi_reduction <add>, %50, %cst_23 [0] : vector<8x8x128xf32> to vector<8x128xf32>
    %52 = arith.addf %49, %51 : vector<8x128xf32>
    %c0_24 = arith.constant 0 : index
    %c0_25 = arith.constant 0 : index
    %53 = vector.load %arg7[%c0_24, %c0_25] : memref<8x128xf32, #tpu.memory_space<vmem>>, vector<8x128xf32>
    tpu.vector_store %arg7[%c0_24, %c0_25], %52 {strides = array<i32>} : memref<8x128xf32, #tpu.memory_space<vmem>>, vector<8x128xf32>,
    %c2_i32 = arith.constant 2 : i32
    %54 = arith.cmpi eq, %arg1, %c2_i32 : i32
    %55 = arith.extui %54 : i1 to i32
    %c0_i32_26 = arith.constant 0 : i32
    %56 = arith.cmpi ne, %55, %c0_i32_26 : i32
    scf.if %56 {
      %c0_27 = arith.constant 0 : index
      %c0_28 = arith.constant 0 : index
      %57 = vector.load %arg5[%c0_27, %c0_28] : memref<8x128xf32, #tpu.memory_space<vmem>>, vector<8x128xf32>
      %c0_29 = arith.constant 0 : index
      %c0_30 = arith.constant 0 : index
      %c0_31 = arith.constant 0 : index
      %c0_32 = arith.constant 0 : index
      %58 = vector.load %arg4[%c0_29, %c0_30, %c0_31, %c0_32] : memref<1x3x8x128xf32, #tpu.memory_space<vmem>>, vector<1x1x8x128xf32>
      %59 = vector.shape_cast %58 : vector<1x1x8x128xf32> to vector<8x128xf32>
      %60 = vector.shape_cast %57 : vector<8x128xf32> to vector<1x1x8x128xf32>
      tpu.vector_store %arg4[%c0_29, %c0_30, %c0_31, %c0_32], %60 {strides = array<i32>} : memref<1x3x8x128xf32, #tpu.memory_space<vmem>>, vector<1x1x8x128xf32>,
      %c0_33 = arith.constant 0 : index
      %c0_34 = arith.constant 0 : index
      %61 = vector.load %arg6[%c0_33, %c0_34] : memref<8x128xf32, #tpu.memory_space<vmem>>, vector<8x128xf32>
      %c0_35 = arith.constant 0 : index
      %c1 = arith.constant 1 : index
      %c0_36 = arith.constant 0 : index
      %c0_37 = arith.constant 0 : index
      %62 = vector.load %arg4[%c0_35, %c1, %c0_36, %c0_37] : memref<1x3x8x128xf32, #tpu.memory_space<vmem>>, vector<1x1x8x128xf32>
      %63 = vector.shape_cast %62 : vector<1x1x8x128xf32> to vector<8x128xf32>
      %64 = vector.shape_cast %61 : vector<8x128xf32> to vector<1x1x8x128xf32>
      tpu.vector_store %arg4[%c0_35, %c1, %c0_36, %c0_37], %64 {strides = array<i32>} : memref<1x3x8x128xf32, #tpu.memory_space<vmem>>, vector<1x1x8x128xf32>,
      %c0_38 = arith.constant 0 : index
      %c0_39 = arith.constant 0 : index
      %65 = vector.load %arg7[%c0_38, %c0_39] : memref<8x128xf32, #tpu.memory_space<vmem>>, vector<8x128xf32>
      %c0_40 = arith.constant 0 : index
      %c2 = arith.constant 2 : index
      %c0_41 = arith.constant 0 : index
      %c0_42 = arith.constant 0 : index
      %66 = vector.load %arg4[%c0_40, %c2, %c0_41, %c0_42] : memref<1x3x8x128xf32, #tpu.memory_space<vmem>>, vector<1x1x8x128xf32>
      %67 = vector.shape_cast %66 : vector<1x1x8x128xf32> to vector<8x128xf32>
      %68 = vector.shape_cast %65 : vector<8x128xf32> to vector<1x1x8x128xf32>
      tpu.vector_store %arg4[%c0_40, %c2, %c0_41, %c0_42], %68 {strides = array<i32>} : memref<1x3x8x128xf32, #tpu.memory_space<vmem>>, vector<1x1x8x128xf32>,
    } else {
    }
    return
  }
  func.func @transform_0(%arg0: i32, %arg1: i32) -> (i32, i32) {
    %c3_i32 = arith.constant 3 : i32
    %0 = arith.muli %arg0, %c3_i32 : i32
    %1 = arith.addi %0, %arg1 : i32
    %c4_i32 = arith.constant 4 : i32
    %2 = arith.minsi %1, %c4_i32 : i32
    %c0_i32 = arith.constant 0 : i32
    %c0_i32_0 = arith.constant 0 : i32
    return %2, %c0_i32 : i32, i32
  }
  func.func @transform_1(%arg0: i32, %arg1: i32) -> (i32, i32) {
    %c3_i32 = arith.constant 3 : i32
    %0 = arith.muli %arg0, %c3_i32 : i32
    %1 = arith.addi %0, %arg1 : i32
    %c4_i32 = arith.constant 4 : i32
    %2 = arith.minsi %1, %c4_i32 : i32
    %c0_i32 = arith.constant 0 : i32
    %c0_i32_0 = arith.constant 0 : i32
    return %2, %c0_i32 : i32, i32
  }
  func.func @transform_2(%arg0: i32, %arg1: i32) -> (i32, i32, i32, i32) {
    %c0_i32 = arith.constant 0 : i32
    %c0_i32_0 = arith.constant 0 : i32
    %c0_i32_1 = arith.constant 0 : i32
    %c0_i32_2 = arith.constant 0 : i32
    return %arg0, %c0_i32, %c0_i32_0, %c0_i32_1 : i32, i32, i32, i32
  }
}

</mosaic_0001>

<bundles_post_ra>
// kernel: tpu_custom_call.1
= control target key start
LH: loop header
LB: loop body
LE: loop exit
PB: predicated region body
PF: predicated region fallthrough
CT: control target
= control target key end

     0   :  { %7 = vsyncpa [#allocation6], 0  ;;  %s1489_s0 = inlined_call_operand.hbm [shape: f32[301,128], index: 0, kind: input, shape index: {}]   ;;  %s1490_s1 = inlined_call_operand.hbm [shape: s32[301,128], index: 1, kind: input, shape index: {}]   ;;  %s1491_s2 = inlined_call_operand.hbm [shape: f32[2,3,8,128], index: 2, kind: output, shape index: {}]  }
   0x1   :  { %9 = vsyncpa [#allocation6 + $0x1], 0 }
   0x2   :  { %10 = vsyncpa [#allocation9], 0 }
   0x3   :  { %12 = vsyncpa [#allocation9 + $0x1], 0 }
   0x4   :  { %13 = vsyncpa [#allocation7], 0 }
   0x5   :  { %15 = vsyncpa [#allocation7 + $0x1], 0  ;;  %s993_s9 = smov 0   ;;  %s995_s10 = smov 0  }
   0x6   :  { %s997_s11 = smov 0   ;;  %s999_s12 = smov 0  }
   0x7   :  { %s1001_s13 = smov 0   ;;  %s1003_s14 = smov 0  }
   0x8   :  { %s1005_s15 = smov 0   ;;  %s1007_s16 = smov 0  }
   0x9   :  { %s1009_s17 = smov 0   ;;  %s1011_s18 = smov 0  }
   0xa   :  { %s1013_s19 = smov 0  }
   0xb LB: > { %1499 = sst [smem:[#allocation14_spill]] %s957_s17  ;;  %s613_s20 = sadd.s32 4294967295, %s965_s19   ;;  %s965_s19 = sphi %s1013_s19, %s21_s19   ;;  %s961_s18 = sphi %s1011_s18, %s1520_s18   ;;  %s957_s17 = sphi %s1009_s17, %s1519_s17   ;;  %s953_s16 = sphi %s1007_s16, %s1518_s16   ;;  %s949_s15 = sphi %s1005_s15, %s1517_s15   ;;  %s945_s14 = sphi %s1003_s14, %s1526_s14   ;;  %s941_s13 = sphi %s1001_s13, %s1525_s13   ;;  %s937_s12 = sphi %s999_s12, %s1524_s12   ;;  %s933_s11 = sphi %s997_s11, %s1523_s11   ;;  %s929_s10 = sphi %s995_s10, %s1522_s10   ;;  %s925_s9 = sphi %s993_s9, %s1521_s9  }
   0xc   : > { %1500 = sst [smem:[#allocation15_spill]] %s961_s18  ;;  %s614_s21 = sadd.s32 4294967294, %s965_s19  }
   0xd   : > { %s30_s22 = sadd.s32 1, %s957_s17  ;;  %s33_s23 = sadd.s32 1, %s961_s18 }
   0xe   : > { %p31_p0 = scmp.ge.s32.totalorder %s30_s22, 3  ;;  %s37_s24 = smul.u32 3, %s961_s18 }
   0xf   : > { %s48_s25 = sadd.s32 1, %s945_s14  ;;  %p55_p1 = scmp.ne.s32.totalorder %s945_s14, %s941_s13 }
  0x10   : > { %s1528_s22 = smov (%p31_p0, %s30_s22), 0  ;;  %s1530_s23 = smov (!%p31_p0, %s33_s23), %s961_s18 }
  0x11   : > { %1501 = sst [smem:[#allocation16_spill]] %s1528_s22  ;;  %s38_s26 = sadd.s32 %s957_s17, %s37_s24 }
  0x12   : > { %p56_p2 = scmp.eq.s32.totalorder %s965_s19, 0  ;;  %p35_p3 = scmp.ge.s32.totalorder %s1530_s23, 2 }
  0x13   : > { %p39_p4 = scmp.lt.s32.totalorder %s38_s26, 4  ;;  %p61_p6 = scmp.ne.s32.totalorder %s941_s13, %s937_s12 }
  0x14   : > { %p1061_p5 = por %p56_p2, %p55_p1  ;;  %s1532_s23 = smov (%p35_p3, %s1530_s23), 0 }
  0x15   : > { %1503 = sst [smem:[#allocation17_spill]] %s1532_s23  ;;  %s1534_s26 = smov (!%p39_p4, %s38_s26), 4 }
  0x16   : > { %s41_s28 = smul.u32 3, %s1532_s23  ;;  %p62_p7 = scmp.eq.s32.totalorder %s613_s20, 0 }
  0x17   : > { %s105_s29 = ssub.s32 %s961_s18, %s1532_s23  ;;  %s108_s30 = sadd.s32 1, %s933_s11 }
  0x18   : > { %s42_s3 = sadd.s32 %s41_s28, %s1528_s22  ;;  %p1076_p8 = por %p62_p7, %p61_p6 }
  0x19   : > { %p43_p9 = scmp.lt.s32.totalorder %s42_s3, 4  ;;  %p106_p10 = scmp.eq.s32.totalorder %s105_s29, 0 }
  0x1a   : > { %p118_p11 = scmp.ne.s32.totalorder %s933_s11, %s929_s10  ;;  %p119_p12 = scmp.eq.s32.totalorder %s613_s20, 5 }
  0x1b   : > { %s1536_s3 = smov (!%p43_p9, %s42_s3), 4  ;;  %p124_p1 = scmp.ne.s32.totalorder %s929_s10, %s925_s9 }
  0x1c   : > { %s1083_s5 = scalar_select %p106_p10, %s933_s11, %s108_s30  }
  0x1d   : > { %s45_s6 = ssub.s32 %s1534_s26, %s1536_s3  ;;  %p1086_p13 = por %p119_p12, %p118_p11 }
  0x1e   : > { %p46_p0 = scmp.eq.s32.totalorder %s45_s6, 0  ;;  %p125_p2 = scmp.eq.s32.totalorder %s614_s21, 5 }
  0x1f   : > { %s1505_s7 = scalar_select %p1086_p13, 1, 0 }
  0x20   : > { %s1097_s8 = scalar_select %p46_p0, %s945_s14, %s48_s25  }
  0x21   : > { %p1099_p3 = por %p125_p2, %p124_p1  ;;  %p616_p4 = scmp.ge.s32.totalorder %s965_s19, 6 }
  0x23   : > { %s1506_s12 = scalar_select %p1099_p3, 1, 0 }
  0x24   : > { %141 = sbr.rel (%p616_p4) target bundleno = 113 (0x71), region = 16 }
  0x2b   : > { %144 = sbr.rel (!%p1061_p5) target bundleno = 78 (0x4e), region = 20  ;;  %s145_s20 = sand.u32 (%p1061_p5), 1, %s945_s14  }
  0x2c   : > { %s618_s24 = sshll.u32 (%p1061_p5), %s1534_s26, 3  ;;  %s617_s28 = sshll.u32 (%p1061_p5), %s145_s20, 6 }
  0x2d   : > { %s155_s29 = ssub.s32 (%p1061_p5), 38, %s618_s24  ;;  %s1111_s30 = scalar_lea.sflag (%p1061_p5), [#allocation6], %s145_s20 }
  0x2e   : > { %p156_p6 = scmp.lt.s32.totalorder (%p1061_p5), %s155_s29, 8  ;;  %s149_s3 = scalar_lea.vmem (%p1061_p5), [#allocation5], %s617_s28 }
  0x32   : > { %s1538_s29 = smov (!%p156_p6, %s155_s29), 8 }
  0x33   : > { %s1108_s21 = sshll.u32 %s1538_s29, 7 }
  0x34   : > { %s160_s25 = ssub.s32 1024, %s1108_s21 }
  0x35   : > { %161 = vsyncadd %s1111_s30, %s160_s25  ;;  %p620_p7 = scmp.ne.s32.totalorder %s1108_s21, 0  ;;  %s642_s6 = sshll.u32 %s1534_s26, 10 }
  0x36   : > { %s1119_s24 = scalar_lea.hbm %s1489_s0, %s642_s6  ;;  %s166_s20 = sshll.u32 %s149_s3, 4  ;;  %s1121_s20 = int_to_ptr.vmem [resolvable:$true] %s166_s20 }
  0x37   : > { %s783_s28 = scalar_lea.hbm %s1119_s24, %s1108_s21  ;;  %s787_s18 = scalar_lea.hbm %s1489_s0, 4864 }
  0x38   : > { %p784_p9 = scmp.ne.s32.totalorder %s1119_s24, %s783_s28  ;;  %p788_p12 = scmp.lt.u32.totalorder %s1119_s24, %s1489_s0 }
  0x39   : > { %p789_p0 = scmp.lt.u32.totalorder %s787_s18, %s783_s28  ;;  %p791_p2 = scmp.lt.u32.totalorder %s783_s28, %s1119_s24 }
  0x3a   : > { %p785_p10 = pnand %p784_p9, %p620_p7 }
  0x3b   : > { %p790_p1 = por %p789_p0, %p788_p12 }
  0x3c   : > { %p786_p11 = pneg %p785_p10 }
  0x3d   : > { %p792_p4 = por %p791_p2, %p790_p1 }
  0x3f   : > { %p793_p6 = pnand %p792_p4, %p786_p11 }
  0x41   : > { %796 = shalt.err (!%p793_p6)
}
  0x42   : > { %s797_s23 = scalar_lea.vmem %s1121_s20, %s1108_s21  ;;  %s967_s3 = smov [#allocation5]  }
  0x43   : > { %p798_p9 = scmp.ne.s32.totalorder %s1121_s20, %s797_s23  ;;  %s801_s6 = sshll.u32 %s967_s3, 4  ;;  %s802_s6 = int_to_ptr.vmem [resolvable:$false] %s801_s6 }
  0x44   : > { %s803_s17 = scalar_lea.vmem %s802_s6, 2048  ;;  %p804_p13 = scmp.lt.s32.totalorder %s1121_s20, %s802_s6 }
  0x45   : > { %p799_p10 = pnand %p798_p9, %p620_p7  ;;  %p805_p12 = scmp.lt.s32.totalorder %s803_s17, %s797_s23 }
  0x47   : > { %p800_p3 = pneg %p799_p10  ;;  %p806_p0 = por %p805_p12, %p804_p13 }
  0x49   : > { %p807_p1 = pnand %p806_p0, %p800_p3 }
  0x4b   : > { %810 = shalt.err (!%p807_p1)
}
  0x4c   : > { %s968_s18 = smov 128   ;;  %s969_s28 = smov 8  }
  0x4d   : > { %172 = dma.hbm_to_vmem [thread:$0]  (%p620_p7), %s1119_s24, %s1108_s21, %s1121_s20, %s1111_s30, %s968_s18, %s968_s18, %s969_s28  }
  0x4e PF: > { %175 = sbr.rel (!%p1061_p5) target bundleno = 113 (0x71), region = 24  ;;  %s176_s29 = sand.u32 (%p1061_p5), 1, %s945_s14  }
  0x4f   : > { %s625_s25 = sshll.u32 (%p1061_p5), %s1534_s26, 3  ;;  %s624_s22 = sshll.u32 (%p1061_p5), %s176_s29, 6 }
  0x50   : > { %s186_s23 = ssub.s32 (%p1061_p5), 38, %s625_s25  ;;  %s1155_s17 = scalar_lea.sflag (%p1061_p5), [#allocation9], %s176_s29 }
  0x51   : > { %p187_p13 = scmp.lt.s32.totalorder (%p1061_p5), %s186_s23, 8  ;;  %s180_s21 = scalar_lea.vmem (%p1061_p5), [#allocation8], %s624_s22 }
  0x55   : > { %s1540_s23 = smov (!%p187_p13, %s186_s23), 8 }
  0x56   : > { %s1152_s3 = sshll.u32 %s1540_s23, 7 }
  0x57   : > { %s191_s6 = ssub.s32 1024, %s1152_s3 }
  0x58   : > { %192 = vsyncadd %s1155_s17, %s191_s6  ;;  %p627_p5 = scmp.ne.s32.totalorder %s1152_s3, 0  ;;  %s643_s27 = sshll.u32 %s1534_s26, 10 }
  0x59   : > { %s1163_s20 = scalar_lea.hbm %s1490_s1, %s643_s27  ;;  %s197_s18 = sshll.u32 %s180_s21, 4  ;;  %s1165_s18 = int_to_ptr.vmem [resolvable:$true] %s197_s18 }
  0x5a   : > { %s811_s28 = scalar_lea.hbm %s1163_s20, %s1152_s3  ;;  %s815_s26 = scalar_lea.hbm %s1490_s1, 4864 }
  0x5b   : > { %p812_p3 = scmp.ne.s32.totalorder %s1163_s20, %s811_s28  ;;  %p816_p2 = scmp.lt.u32.totalorder %s1163_s20, %s1490_s1 }
  0x5c   : > { %p817_p4 = scmp.lt.u32.totalorder %s815_s26, %s811_s28  ;;  %p819_p9 = scmp.lt.u32.totalorder %s811_s28, %s1163_s20 }
  0x5d   : > { %p813_p7 = pnand %p812_p3, %p627_p5 }
  0x5e   : > { %p818_p6 = por %p817_p4, %p816_p2 }
  0x5f   : > { %p814_p11 = pneg %p813_p7 }
  0x60   : > { %p820_p10 = por %p819_p9, %p818_p6 }
  0x62   : > { %p821_p12 = pnand %p820_p10, %p814_p11 }
  0x64   : > { %824 = shalt.err (!%p821_p12)
}
  0x65   : > { %s825_s6 = scalar_lea.vmem %s1165_s18, %s1152_s3  ;;  %s970_s21 = smov [#allocation8]  }
  0x66   : > { %p826_p0 = scmp.ne.s32.totalorder %s1165_s18, %s825_s6  ;;  %s829_s27 = sshll.u32 %s970_s21, 4  ;;  %s830_s27 = int_to_ptr.vmem [resolvable:$false] %s829_s27 }
  0x67   : > { %s831_s30 = scalar_lea.vmem %s830_s27, 2048  ;;  %p832_p3 = scmp.lt.s32.totalorder %s1165_s18, %s830_s27 }
  0x68   : > { %p827_p1 = pnand %p826_p0, %p627_p5  ;;  %p833_p7 = scmp.lt.s32.totalorder %s831_s30, %s825_s6 }
  0x6a   : > { %p828_p13 = pneg %p827_p1  ;;  %p834_p2 = por %p833_p7, %p832_p3 }
  0x6c   : > { %p835_p4 = pnand %p834_p2, %p828_p13 }
  0x6e   : > { %838 = shalt.err (!%p835_p4)
}
  0x6f   : > { %s971_s24 = smov 128   ;;  %s972_s28 = smov 8  }
  0x70   : > { %203 = dma.hbm_to_vmem [thread:$0]  (%p627_p5), %s1163_s20, %s1152_s3, %s1165_s18, %s1155_s17, %s971_s24, %s971_s24, %s972_s28  }
  0x71 PF: > { %p631_p11 = scmp.ge.s32.totalorder %s965_s19, 1  ;;  %p205_p6 = scmp.lt.s32.totalorder %s965_s19, 7 }
  0x73   : > { %p206_p9 = pnand %p631_p11, %p205_p6 }
  0x74   : > { %s211_s29 = sand.u32 (!%p206_p9), 1, %s941_s13  }
  0x75   : > { %209 = sbr.rel (%p206_p9) target bundleno = 235 (0xeb), region = 28  ;;  %s632_s25 = sshll.u32 (!%p206_p9), %s211_s29, 6 }
  0x76   : > { %s212_s26 = scalar_lea.sflag (!%p206_p9), [#allocation6], %s211_s29  ;;  %s1195_s22 = scalar_lea.vmem (!%p206_p9), [#allocation5], %s632_s25 }
  0x7c   : > { %912 = dma.done.wait (%p1076_p8), %s212_s26, 1024  }
  0x7d   : > { %914 = vsyncadd (%p1076_p8), %s212_s26, 4294966272  ;;  %s221_s3 = scalar_lea.sflag [#allocation9], %s211_s29  ;;  %s1201_s17 = scalar_lea.vmem [#allocation8], %s632_s25 }
  0x7e   : > { %916 = dma.done.wait (%p1076_p8), %s221_s3, 1024  }
  0x7f   : > { %918 = vsyncadd (%p1076_p8), %s221_s3, 4294966272  ;;  %s247_s20 = sand.u32 1, %s929_s10   ;;  %p634_p5 = scmp.ne.s32.totalorder %s949_s15, 0 }
  0x80   : > { %s644_s18 = smul.u32 24, %s247_s20  ;;  %v973_v0 = vmov (!%p634_p5), 0.0  }
  0x81   : > { %271 = sbr.rel (%p634_p5) target bundleno = 136 (0x88), region = 40  ;;  %272 = vst [vmem:[#allocation2] sm:$0xff] (!%p634_p5), %v973_v0  ;;  %273 = vst [vmem:[#allocation3] sm:$0xff] (!%p634_p5), %v973_v0 }
  0x82   : > { %s1210_s23 = scalar_lea.vmem [#allocation10], %s644_s18  ;;  %274 = vst [vmem:[#allocation4] sm:$0xff] (!%p634_p5), %v973_v0 }
  0x88 PF: > { %s275_s6 = smul.u32 3, %s953_s16  ;;  %v278_v1 = vlaneseq  ;;  %v1220_v29 = vld [vmem:[%s1201_s17] sm:$0xff]  ;;  %v1227_v33 = vld [vmem:[%s1201_s17 + $0x8] sm:$0xff]  ;;  %v324_v39 = vld [vmem:[%s1195_s22 + $0x10] sm:$0xff]  ;;  %v974_v58 = vmov 0.0   ;;  %p636_p8 = scmp.ne.s32.totalorder %s949_s15, 2 }
  0x89   : > { %v322_v36 = vld [vmem:[%s1195_s22] sm:$0xff]  ;;  %vm346_vm0 = vcmp.eq.s32.totalorder %v1220_v29, 0  ;;  %v323_v38 = vld [vmem:[%s1195_s22 + $0x8] sm:$0xff]  ;;  %v1242_v40 = vld [vmem:[%s1201_s17 + $0x10] sm:$0xff]  ;;  %vm347_vm3 = vcmp.eq.s32.totalorder %v1227_v33, 0 }
  0x8a   : > { %s276_s4 = sadd.s32 %s949_s15, %s275_s6  ;;  %v279_v2 = vshrl.u32 %v278_v1, 7  ;;  %v288_v15 = vand.u32 127, %v278_v1  ;;  %v325_v42 = vld [vmem:[%s1195_s22 + $0x18] sm:$0xff]  ;;  %v326_v43 = vld [vmem:[%s1195_s22 + $0x20] sm:$0xff]  ;;  %v327_v45 = vld [vmem:[%s1195_s22 + $0x28] sm:$0xff]  ;;  %vm348_vm9 = vcmp.eq.s32.totalorder %v1242_v40, 0 }
  0x8b   : > { %s635_s21 = sshll.u32 %s276_s4, 6  ;;  %v1252_v44 = vld [vmem:[%s1201_s17 + $0x18] sm:$0xff]  ;;  %v1258_v46 = vld [vmem:[%s1201_s17 + $0x20] sm:$0xff]  ;;  %v328_v50 = vld [vmem:[%s1195_s22 + $0x30] sm:$0xff] }
  0x8c   : > { %v280_v3 = vadd.s32 8, %v279_v2  ;;  %v281_v4 = vadd.s32 16, %v279_v2  ;;  %v282_v5 = vadd.s32 24, %v279_v2  ;;  %v283_v6 = vadd.s32 32, %v279_v2  ;;  %v329_v53 = vld [vmem:[%s1195_s22 + $0x38] sm:$0xff]  ;;  %v1291_v56 = vld [vmem:[%s1201_s17 + $0x28] sm:$0xff] }
  0x8d   : > { %v284_v7 = vadd.s32 40, %v279_v2  ;;  %v285_v8 = vadd.s32 48, %v279_v2  ;;  %v286_v9 = vadd.s32 56, %v279_v2  ;;  %v289_v10 = vstv %s635_s21 }
  0x8e   : > { %v290_v11 = vadd.s32 %v289_v10, %v279_v2  ;;  %v291_v12 = vadd.s32 %v289_v10, %v280_v3  ;;  %v292_v13 = vadd.s32 %v289_v10, %v281_v4  ;;  %v293_v14 = vadd.s32 %v289_v10, %v282_v5  ;;  %v1315_v4 = vld [vmem:[%s1201_s17 + $0x30] sm:$0xff] }
  0x8f   : > { %v294_v16 = vadd.s32 %v289_v10, %v283_v6  ;;  %v295_v17 = vadd.s32 %v289_v10, %v284_v7  ;;  %v296_v18 = vadd.s32 %v289_v10, %v285_v8  ;;  %v297_v19 = vadd.s32 %v289_v10, %v286_v9  ;;  %v1328_v8 = vld [vmem:[%s1201_s17 + $0x38] sm:$0xff] }
  0x90   : > { %v298_v20 = vmul.u32 128, %v290_v11  ;;  %v299_v21 = vmul.u32 128, %v291_v12  ;;  %vm349_vm12 = vcmp.eq.s32.totalorder %v1252_v44, 0  ;;  %vm350_vm14 = vcmp.eq.s32.totalorder %v1258_v46, 0 }
  0x91   : > { %v300_v22 = vmul.u32 128, %v292_v13  ;;  %v301_v23 = vmul.u32 128, %v293_v14 }
  0x92   : > { %v302_v24 = vmul.u32 128, %v294_v16  ;;  %v303_v25 = vmul.u32 128, %v295_v17  ;;  %v1215_v27 = vadd.s32 %v298_v20, %v288_v15  ;;  %v1217_v28 = vadd.s32 %v299_v21, %v288_v15 }
  0x93   : > { %v304_v26 = vmul.u32 128, %v296_v18  ;;  %v305_v30 = vmul.u32 128, %v297_v19  ;;  %v1222_v31 = vadd.s32 %v300_v22, %v288_v15  ;;  %v1224_v32 = vadd.s32 %v301_v23, %v288_v15 }
  0x94   : > { %v1229_v34 = vadd.s32 %v302_v24, %v288_v15  ;;  %v1231_v35 = vadd.s32 %v303_v25, %v288_v15  ;;  %vm314_vm1 = vcmp.lt.s32.totalorder %v1215_v27, 38417  ;;  %vm315_vm2 = vcmp.lt.s32.totalorder %v1217_v28, 38417  ;;  %v426_v24 = vld [vmem:[#allocation2] sm:$0xff] }
  0x95   : > { %v1235_v37 = vadd.s32 %v304_v26, %v288_v15  ;;  %v1245_v41 = vadd.s32 %v305_v30, %v288_v15  ;;  %vm316_vm4 = vcmp.lt.s32.totalorder %v1222_v31, 38417  ;;  %vm317_vm5 = vcmp.lt.s32.totalorder %v1224_v32, 38417  ;;  %vm1264_vm8 = vmand %vm346_vm0, %vm314_vm1 }
  0x96   : > { %vm318_vm6 = vcmp.lt.s32.totalorder %v1229_v34, 38417  ;;  %vm319_vm7 = vcmp.lt.s32.totalorder %v1231_v35, 38417  ;;  %v330_v48 = vsel %vm314_vm1, %v322_v36, 0.0  ;;  %v331_v49 = vsel %vm315_vm2, %v323_v38, 0.0  ;;  %vm355_vm10 = vmand %vm347_vm3, %vm315_vm2 }
  0x97   : > { %vm1498_vm11 = vcmp.lt.s32.totalorder %v1235_v37, 38417  ;;  %v332_v51 = vsel %vm316_vm4, %v324_v39, 0.0  ;;  %v333_v52 = vsel %vm317_vm5, %v325_v42, 0.0  ;;  %vm1497_vm13 = vcmp.lt.s32.totalorder %v1245_v41, 38417  ;;  %vm1296_vm15 = vmand %vm348_vm9, %vm316_vm4 }
  0x98   : > { %v334_v54 = vsel %vm318_vm6, %v326_v43, 0.0  ;;  %v335_v55 = vsel %vm319_vm7, %v327_v45, 0.0  ;;  %v1303_v59 = vsel %vm1264_vm8, 1.0, %v974_v58  ;;  %v1306_v60 = vsel %vm355_vm10, 1.0, %v974_v58  ;;  %vm357_vm0 = vmand %vm349_vm12, %vm317_vm5 }
  0x99   : > { %v394_v61 = vmul.f32 1.442695, %v330_v48  ;;  %v396_v62 = vmul.f32 1.442695, %v331_v49  ;;  %v336_v63 = vsel %vm1498_vm11, %v328_v50, 0.0  ;;  %v427_v2 = vadd.f32 %v1306_v60, %v1303_v59  ;;  %vm358_vm8 = vmand %vm350_vm14, %vm318_vm6 }
  0x9a   : > { %v398_v0 = vmul.f32 1.442695, %v332_v51  ;;  %v400_v1 = vmul.f32 1.442695, %v333_v52  ;;  %v337_v3 = vsel %vm1497_vm13, %v329_v53, 0.0  ;;  %vm351_vm3 = vcmp.eq.s32.totalorder %v1291_v56, 0 }
  0x9b   : > { %751 = vpow2.f32 %v394_v61  ;;  %v402_v5 = vmul.f32 1.442695, %v334_v54  ;;  %v1325_v6 = vsel %vm1296_vm15, 1.0, %v974_v58  ;;  %v404_v7 = vmul.f32 1.442695, %v335_v55  ;;  %vm359_vm10 = vmand %vm351_vm3, %vm319_vm7 }
  0x9c   : > { %753 = vpow2.f32 %v396_v62  ;;  %v406_v9 = vmul.f32 1.442695, %v336_v63  ;;  %v428_v10 = vadd.f32 %v427_v2, %v1325_v6  ;;  %vm352_vm9 = vcmp.eq.s32.totalorder %v1315_v4, 0 }
  0x9d   : > { %755 = vpow2.f32 %v398_v0  ;;  %v1337_v11 = vsel %vm357_vm0, 1.0, %v974_v58  ;;  %v408_v12 = vmul.f32 1.442695, %v337_v3  ;;  %vm353_vm12 = vcmp.eq.s32.totalorder %v1328_v8, 0  ;;  %vm360_vm14 = vmand %vm352_vm9, %vm1498_vm11 }
  0x9e   : > { %757 = vpow2.f32 %v400_v1  ;;  %v429_v13 = vadd.f32 %v428_v10, %v1337_v11  ;;  %v1344_v14 = vsel %vm358_vm8, 1.0, %v974_v58  ;;  %v1350_v16 = vsel %vm359_vm10, 1.0, %v974_v58  ;;  %vm361_vm15 = vmand %vm353_vm12, %vm1497_vm13 }
  0x9f   : > { %759 = vpow2.f32 %v402_v5  ;;  %v1356_v18 = vsel %vm360_vm14, 1.0, %v974_v58  ;;  %v1360_v22 = vsel %vm361_vm15, 1.0, %v974_v58  ;;  %vm370_vm0 = vcmp.eq.s32.totalorder %v1220_v29, 1 }
  0xa0   : > { %761 = vpow2.f32 %v404_v7  ;;  %v430_v15 = vadd.f32 %v429_v13, %v1344_v14  ;;  %vm371_vm3 = vcmp.eq.s32.totalorder %v1227_v33, 1  ;;  %vm372_vm8 = vcmp.eq.s32.totalorder %v1242_v40, 1  ;;  %vm378_vm10 = vmand %vm370_vm0, %vm314_vm1 }
  0xa1   : > { %763 = vpow2.f32 %v406_v9  ;;  %vm373_vm9 = vcmp.eq.s32.totalorder %v1252_v44, 1  ;;  %vm379_vm12 = vmand %vm371_vm3, %vm315_vm2  ;;  %vm374_vm15 = vcmp.eq.s32.totalorder %v1258_v46, 1  ;;  %v386_v33 = vsel %vm378_vm10, 1.0, %v974_v58 }
  0xa2   : > { %765 = vpow2.f32 %v408_v12  ;;  %v431_v17 = vadd.f32 %v430_v15, %v1350_v16  ;;  %vm380_vm14 = vmand %vm372_vm8, %vm316_vm4  ;;  %vm375_vm11 = vcmp.eq.s32.totalorder %v1291_v56, 1  ;;  %v387_v27 = vsel %vm379_vm12, 1.0, %v974_v58 }
  0xa3   : > { %vm381_vm13 = vmand %vm373_vm9, %vm317_vm5  ;;  %vm376_vm1 = vcmp.eq.s32.totalorder %v1315_v4, 1  ;;  %v388_v31 = vsel %vm380_vm14, 1.0, %v974_v58  ;;  %vm377_vm5 = vcmp.eq.s32.totalorder %v1328_v8, 1 }
  0xa4   : > { %v432_v20 = vadd.f32 %v431_v17, %v1356_v18  ;;  %vm1385_vm2 = vmand %vm374_vm15, %vm318_vm6  ;;  %v389_v57 = vsel %vm381_vm13, 1.0, %v974_v58  ;;  %vm1513_vm6 = vcmp.lt.s32.totalorder %v1235_v37, 38417 }
  0xa5   : > { %v752_v19 = vpop.eup %751  ;;  %vm383_vm4 = vmand %vm375_vm11, %vm319_vm7  ;;  %vm1514_vm7 = vcmp.lt.s32.totalorder %v1245_v41, 38417 }
  0xa6   : > { %v754_v21 = vpop.eup %753  ;;  %v410_v23 = vadd.f32 1.0, %v752_v19  ;;  %v433_v30 = vadd.f32 %v432_v20, %v1360_v22  ;;  %vm384_vm13 = vmand %vm376_vm1, %vm1513_vm6  ;;  %v391_v13 = vsel %vm383_vm4, 1.0, %v974_v58 }
  0xa7   : > { %v756_v25 = vpop.eup %755  ;;  %v411_v26 = vadd.f32 1.0, %v754_v21  ;;  %vm385_vm11 = vmand %vm377_vm5, %vm1514_vm7  ;;  %v392_v37 = vsel %vm384_vm13, 1.0, %v974_v58 }
  0xa8   : > { %v758_v36 = vpop.eup %757  ;;  %v412_v38 = vadd.f32 1.0, %v756_v25  ;;  %767 = vrcp.f32 %v410_v23  ;;  %v434_v43 = vadd.f32 %v433_v30, %v426_v24  ;;  %v393_v25 = vsel %vm385_vm11, 1.0, %v974_v58 }
  0xa9   : > { %v760_v39 = vpop.eup %759  ;;  %v413_v42 = vadd.f32 1.0, %v758_v36  ;;  %769 = vrcp.f32 %v411_v26 }
  0xaa   : > { %v762_v45 = vpop.eup %761  ;;  %v414_v47 = vadd.f32 1.0, %v760_v39  ;;  %771 = vrcp.f32 %v412_v38  ;;  %435 = vst [vmem:[#allocation2] sm:$0xff] %v434_v43  ;;  %v444_v38 = vld [vmem:[#allocation3] sm:$0xff] }
  0xab   : > { %v764_v48 = vpop.eup %763  ;;  %v415_v49 = vadd.f32 1.0, %v762_v45  ;;  %773 = vrcp.f32 %v413_v42 }
  0xac   : > { %v766_v50 = vpop.eup %765  ;;  %v416_v51 = vadd.f32 1.0, %v764_v48  ;;  %775 = vrcp.f32 %v414_v47  ;;  %v470_v48 = vld [vmem:[#allocation4] sm:$0xff] }
  0xad   : > { %v417_v52 = vadd.f32 1.0, %v766_v50  ;;  %777 = vrcp.f32 %v415_v49 }
  0xae   : > { %779 = vrcp.f32 %v416_v51 }
  0xaf   : > { %781 = vrcp.f32 %v417_v52 }
  0xb2   : > { %v768_v29 = vpop.eup %767 }
  0xb3   : > { %v770_v40 = vpop.eup %769  ;;  %v436_v28 = vmul.f32 %v768_v29, %v1303_v59  ;;  %v454_v44 = vsub.f32 1.0, %v768_v29 }
  0xb4   : > { %v772_v53 = vpop.eup %771  ;;  %v437_v46 = vmul.f32 %v770_v40, %v1306_v60  ;;  %v455_v54 = vsub.f32 1.0, %v770_v40 }
  0xb5   : > { %v774_v32 = vpop.eup %773  ;;  %v438_v59 = vmul.f32 %v772_v53, %v1325_v6  ;;  %v456_v61 = vsub.f32 1.0, %v772_v53  ;;  %v462_v62 = vmul.f32 %v454_v44, %v386_v33  ;;  %v390_v6 = vsel %vm1385_vm2, 1.0, %v974_v58  ;;  %v484_v58 = vld [vmem:[#allocation2] sm:$0xff] (!%p636_p8) }
  0xb6   : > { %v776_v63 = vpop.eup %775  ;;  %v439_v0 = vmul.f32 %v774_v32, %v1337_v11  ;;  %v445_v1 = vadd.f32 %v437_v46, %v436_v28  ;;  %v457_v2 = vsub.f32 1.0, %v774_v32  ;;  %v463_v60 = vmul.f32 %v455_v54, %v387_v27  ;;  %485 = vst [vmem:[%s1210_s23] sm:$0xff] (!%p636_p8), %v484_v58 }
  0xb7   : > { %v778_v3 = vpop.eup %777  ;;  %v458_v34 = vsub.f32 1.0, %v776_v63  ;;  %v464_v5 = vmul.f32 %v456_v61, %v388_v31  ;;  %v440_v9 = vmul.f32 %v776_v63, %v1344_v14 }
  0xb8   : > { %v780_v7 = vpop.eup %779  ;;  %v446_v10 = vadd.f32 %v445_v1, %v438_v59  ;;  %v459_v35 = vsub.f32 1.0, %v778_v3  ;;  %v465_v56 = vmul.f32 %v457_v2, %v389_v57  ;;  %v471_v11 = vadd.f32 %v463_v60, %v462_v62 }
  0xb9   : > { %v782_v12 = vpop.eup %781  ;;  %v441_v8 = vmul.f32 %v778_v3, %v1350_v16  ;;  %v460_v17 = vsub.f32 1.0, %v780_v7  ;;  %v466_v14 = vmul.f32 %v458_v34, %v390_v6  ;;  %v442_v4 = vmul.f32 %v780_v7, %v1356_v18 }
  0xba   : > { %v447_v15 = vadd.f32 %v446_v10, %v439_v0  ;;  %v472_v19 = vadd.f32 %v471_v11, %v464_v5  ;;  %v461_v21 = vsub.f32 1.0, %v782_v12  ;;  %v467_v23 = vmul.f32 %v459_v35, %v391_v13 }
  0xbb   : > { %v443_v26 = vmul.f32 %v782_v12, %v1360_v22  ;;  %v468_v30 = vmul.f32 %v460_v17, %v392_v37 }
  0xbc   : > { %v448_v20 = vadd.f32 %v447_v15, %v440_v9  ;;  %v473_v24 = vadd.f32 %v472_v19, %v465_v56  ;;  %v469_v39 = vmul.f32 %v461_v21, %v393_v25 }
  0xbe   : > { %v449_v16 = vadd.f32 %v448_v20, %v441_v8  ;;  %v474_v36 = vadd.f32 %v473_v24, %v466_v14 }
  0xc0   : > { %v450_v41 = vadd.f32 %v449_v16, %v442_v4  ;;  %v475_v42 = vadd.f32 %v474_v36, %v467_v23 }
  0xc2   : > { %v451_v43 = vadd.f32 %v450_v41, %v443_v26  ;;  %v476_v45 = vadd.f32 %v475_v42, %v468_v30  ;;  %483 = sbr.rel (%p636_p8) target bundleno = 209 (0xd1), region = 44 }
  0xc4   : > { %v452_v47 = vadd.f32 %v451_v43, %v444_v38  ;;  %v477_v18 = vadd.f32 %v476_v45, %v469_v39 }
  0xc6   : > { %453 = vst [vmem:[#allocation3] sm:$0xff] %v452_v47  ;;  %v478_v49 = vadd.f32 %v477_v18, %v470_v48 }
  0xc8   : > { %479 = vst [vmem:[#allocation4] sm:$0xff] %v478_v49 }
  0xcd   : > { %v486_v22 = vld [vmem:[#allocation3] sm:$0xff] }
  0xce   : > { %637 = vst [vmem:[%s1210_s23 + $0x8] sm:$0xff] %v486_v22 }
  0xcf   : > { %v489_v50 = vld [vmem:[#allocation4] sm:$0xff] }
  0xd0   : > { %638 = vst [vmem:[%s1210_s23 + $0x10] sm:$0xff] %v489_v50 }
  0xd1 PF: > { %s645_s27 = smul.u32 384, %s953_s16  ;;  %s506_s30 = sshll.u32 %s1210_s23, 4  ;;  %s1424_s30 = int_to_ptr.vmem [resolvable:$true] %s506_s30 }
  0xd2   : > { %s1428_s29 = scalar_lea.sflag [#allocation7], %s247_s20  ;;  %s839_s25 = scalar_lea.vmem %s1424_s30, 384 }
  0xd3   : > { %s1422_s15 = scalar_lea.hbm %s1491_s2, %s645_s27  ;;  %p840_p10 = scmp.ne.s32.totalorder %s1424_s30, %s839_s25 }
  0xd4   : > { %p1515_p12 = scmp.ne.s32.totalorder %s1505_s7, 0  ;;  %s975_s16 = smov [#allocation10]  }
  0xd5   : > { %s843_s26 = sshll.u32 %s975_s16, 4  ;;  %s844_s26 = int_to_ptr.vmem [resolvable:$false] %s843_s26 }
  0xd6   : > { %p841_p0 = pnand %p840_p10, %p1515_p12  ;;  %s845_s22 = scalar_lea.vmem %s844_s26, 768 }
  0xd7   : > { %p846_p13 = scmp.lt.s32.totalorder %s1424_s30, %s844_s26  ;;  %p847_p3 = scmp.lt.s32.totalorder %s845_s22, %s839_s25 }
  0xd8   : > { %p842_p1 = pneg %p841_p0 }
  0xd9   : > { %p848_p7 = por %p847_p3, %p846_p13 }
  0xdb   : > { %p849_p2 = pnand %p848_p7, %p842_p1 }
  0xdd   : > { %852 = shalt.err (!%p849_p2)
}
  0xde   : > { %s853_s3 = scalar_lea.hbm %s1422_s15, 384  ;;  %s857_s18 = scalar_lea.hbm %s1491_s2, 768 }
  0xdf   : > { %p854_p4 = scmp.ne.s32.totalorder %s1422_s15, %s853_s3  ;;  %p858_p9 = scmp.lt.u32.totalorder %s1422_s15, %s1491_s2 }
  0xe0   : > { %p859_p5 = scmp.lt.u32.totalorder %s857_s18, %s853_s3  ;;  %p861_p10 = scmp.lt.u32.totalorder %s853_s3, %s1422_s15 }
  0xe1   : > { %p855_p11 = pnand %p854_p4, %p1515_p12 }
  0xe2   : > { %p860_p8 = por %p859_p5, %p858_p9 }
  0xe3   : > { %p856_p6 = pneg %p855_p11 }
  0xe4   : > { %p862_p0 = por %p861_p10, %p860_p8 }
  0xe6   : > { %p863_p1 = pnand %p862_p0, %p856_p6 }
  0xe8   : > { %866 = shalt.err (!%p863_p1)
}
  0xe9   : > { %s976_s4 = smov 128   ;;  %s977_s21 = smov 8  }
  0xea   : > { %648 = dma.vmem_to_hbm [thread:$0]  (%p1515_p12), %s1424_s30, 384, %s1422_s15, %s1428_s29, %s976_s4, %s976_s4, %s977_s21  }
  0xeb PF: > { %p654_p13 = scmp.ge.s32.totalorder %s965_s19, 2  ;;  %s521_s27 = sand.u32 1, %s925_s9  }
  0xec   : > { %p1516_p3 = scmp.ne.s32.totalorder %s1506_s12, 0  ;;  %s522_s24 = scalar_lea.sflag [#allocation7], %s521_s27 }
  0xee   : > { %p651_p7 = pnand %p654_p13, %p1516_p3 }
  0xf0   : > { %920 = dma.done.wait (!%p651_p7), %s522_s24, 384  }
  0xf1   : > { %922 = vsyncadd (!%p651_p7), %s522_s24, 4294966912  ;;  %s21_s19 = sadd.s32 1, %s965_s19   ;;  %s1517_s15 = sld [smem:[#allocation14_spill]] }
  0xf2   : > { %p18_p2 = scmp.ge.s32.totalorder %s21_s19, 8   ;;  %s1518_s16 = sld [smem:[#allocation15_spill]] }
  0xf3   : > { %s1519_s17 = sld [smem:[#allocation16_spill]]  ;;  %s1520_s18 = sld [smem:[#allocation17_spill]] }
  0xf4   : > { %s1521_s9 = smov %s929_s10  ;;  %s1522_s10 = smov %s933_s11 }
  0xf5   : > { %s1523_s11 = smov %s1083_s5  ;;  %s1524_s12 = smov %s941_s13 }
  0xf6   : > { %s1525_s13 = smov %s945_s14  ;;  %s1526_s14 = smov %s1097_s8 }
  0xf7   :  { %20 = sbr.rel (!%p18_p2) target bundleno = 11 (0xb), region = 96 }
  0xfe   :  { %527 = vsyncpa [#allocation6], 1 }
  0xff   :  { %529 = vsyncpa [#allocation6 + $0x1], 1 }
 0x100   :  { %530 = vsyncpa [#allocation9], 1 }
 0x101   :  { %532 = vsyncpa [#allocation9 + $0x1], 1 }
 0x102   :  { %533 = vsyncpa [#allocation7], 1 }
 0x103   :  { %535 = vsyncpa [#allocation7 + $0x1], 1 }

</bundles_post_ra>
